<compile_context>
chip_gen: v6e
topology: v6e:2x2x1
jax: 0.10.0
libtpu: 0.0.40
codegen_flags: <defaults>
</compile_context>

<pallas_src>
import functools

import jax
import jax.numpy as jnp
from jax.experimental import pallas as pl
from jax.experimental.pallas import tpu as pltpu


def _rmsnorm_kernel(x_ref, w_ref, o_ref, *, eps: float):
    # x_ref: (tile_rows, dim) tile; w_ref: (1, dim) pre-promoted f32 weight.
    # The reduction is strictly per-row, so garbage rows in a ragged
    # (padded) last block cannot contaminate valid rows; out-of-range output
    # rows are masked by Pallas.  Do NOT add any cross-row reduction here.
    x = x_ref[...].astype(jnp.float32)                  # x.float()
    ms = jnp.mean(x * x, axis=-1, keepdims=True)        # mean(x^2) over last dim
    n = x * jax.lax.rsqrt(ms + eps)                     # x * rsqrt(ms + eps)
    o_ref[...] = (w_ref[...] * n).astype(o_ref.dtype)   # weight.type_as(x) * n


def _vmem_capacity_bytes() -> int:
    """Physical VMEM per TensorCore; conservative fallback if the query fails."""
    try:
        return int(pltpu.get_tpu_info().vmem_capacity_bytes)
    except Exception:
        return 64 * 1024 * 1024   # v7x-sized conservative default


def _pick_tile_rows(rows: int, dim: int, in_dtype, out_dtype,
                    vmem_capacity: int) -> int:
    """VMEM-budgeted row tile.

    Big enough to amortize the ~0.35 us per-grid-step overhead, small enough
    that double-buffered in+out tiles (plus one f32 temporary for sub-32-bit
    inputs) stay inside roughly half of this generation's physical VMEM, with
    the input tile itself capped at ~16 MiB and at least ~4 grid steps when
    the row count allows (double-buffer overlap / v7x megacore).
    """
    in_b = jnp.dtype(in_dtype).itemsize
    out_b = jnp.dtype(out_dtype).itemsize
    # Sublane packing multiple: 8 for 4-byte dtypes, 16 for 2-byte, 32 for 1-byte.
    mult = max(8, 32 // in_b)

    # One f32 tile-sized temporary when the kernel upcasts a sub-32-bit input.
    tmp_b = 4 if in_b < 4 else 0

    # Per-row VMEM bytes: double-buffered in + out tiles, plus the f32 temp.
    per_row = 2 * (in_b + out_b) * dim + tmp_b * dim

    # Generation-aware budget: ~half of physical VMEM, minus headroom for
    # compiler temporaries.  -> ~24 MiB on v7x (64 MiB), ~56 MiB on v5e/v6e.
    budget = min(max(vmem_capacity // 2 - (8 << 20), 16 << 20), 56 << 20)

    tile = budget // max(per_row, 1)

    # Per-buffer byte cap: keep the input tile itself <= ~16 MiB.
    tile = min(tile, (16 << 20) // max(in_b * dim, 1))

    tile = max(mult, (tile // mult) * mult)

    # Ensure >= ~4 grid steps when rows allow (pipelining + v7x two-TC sharding).
    min_steps = 4
    steps_cap = (((rows + min_steps - 1) // min_steps) + mult - 1) // mult * mult
    tile = min(tile, max(steps_cap, mult))

    # Don't exceed the data (rounded up to the packing multiple).
    tile = min(tile, ((rows + mult - 1) // mult) * mult)
    return int(max(tile, mult))


def rmsnorm(x: jax.Array, weight: jax.Array, eps: float = 1e-8,
            out_dtype=jnp.float32, tile_rows: int | None = None) -> jax.Array:
    """RMSNorm over the last axis of `x`, scaled by `weight` (shape [dim]).

    out_dtype=jnp.float32 (default) matches the PyTorch promotion semantics.
    Passing out_dtype=x.dtype (e.g. bf16) is a lower-HBM-traffic fast path
    that changes only the final store dtype, not the f32 math.
    """
    orig_shape = x.shape
    dim = orig_shape[-1]
    assert weight.shape == (dim,)

    rows = 1
    for s in orig_shape[:-1]:
        rows *= s
    x2d = x.reshape(rows, dim)

    vmem_capacity = _vmem_capacity_bytes()
    if tile_rows is None:
        tile_rows = _pick_tile_rows(rows, dim, x.dtype, out_dtype, vmem_capacity)

    # weight.type_as(x), then promotion against the f32 normalized tensor —
    # hoisted out of the kernel so it runs once, not per grid step.
    w2d = weight.astype(x.dtype).astype(jnp.float32).reshape(1, dim)

    in_b = x.dtype.itemsize
    out_b = jnp.dtype(out_dtype).itemsize
    tmp_b = 4 if in_b < 4 else 0
    # Double-buffered in+out tiles + one f32 temp tile (for sub-32-bit inputs)
    # + double-buffered weight row, then slop for compiler temporaries.
    vmem_needed = (2 * tile_rows * dim * (in_b + out_b)
                   + tile_rows * dim * tmp_b
                   + 2 * dim * 4)
    vmem_limit = int(min(max(vmem_needed + (8 << 20), 32 << 20),
                         vmem_capacity - (4 << 20)))

    # Ragged last block (rows % tile_rows != 0) is handled by masked writes —
    # no padding copy of x is ever materialized in HBM.  This is safe only
    # because the kernel's reduction is strictly per-row (see kernel comment).
    grid = (pl.cdiv(rows, tile_rows),)

    kernel = functools.partial(_rmsnorm_kernel, eps=eps)
    out = pl.pallas_call(
        kernel,
        out_shape=jax.ShapeDtypeStruct((rows, dim), out_dtype),
        grid_spec=pltpu.PrefetchScalarGridSpec(
            num_scalar_prefetch=0,
            grid=grid,
            in_specs=[
                pl.BlockSpec((tile_rows, dim), lambda i: (i, 0)),
                pl.BlockSpec((1, dim), lambda i: (0, 0)),
            ],
            out_specs=pl.BlockSpec((tile_rows, dim), lambda i: (i, 0)),
        ),
        compiler_params=pltpu.CompilerParams(
            dimension_semantics=("parallel",),
            vmem_limit_bytes=vmem_limit,
        ),
    )(x2d, w2d)

    return out.reshape(orig_shape[:-1] + (dim,))


def rmsnorm_ref(x, weight, eps=1e-8):
    xf = x.astype(jnp.float32)
    n = xf * jax.lax.rsqrt(jnp.mean(xf * xf, axis=-1, keepdims=True) + eps)
    return weight.astype(x.dtype).astype(jnp.float32) * n


if __name__ == "__main__":
    key = jax.random.PRNGKey(0)

    # Main case: small shapes with a lane-dense hidden dim (multiple of 128).
    batch, seq, hidden = 2, 8, 256
    x = jax.random.normal(key, (batch, seq, hidden), dtype=jnp.float32)
    # Deterministic parameter init: nn.Parameter(torch.ones(dim))
    weight = jnp.ones((hidden,), dtype=jnp.float32)

    out = jax.block_until_ready(rmsnorm(x, weight, eps=1e-8))
    ref = rmsnorm_ref(x, weight, eps=1e-8)
    assert out.shape == (batch, seq, hidden)
    assert out.dtype == jnp.float32
    assert jnp.allclose(out, ref, atol=1e-5, rtol=1e-5)

    # Ragged row count (rows % tile_rows != 0): exercised with no padding copy.
    x2 = jax.random.normal(jax.random.PRNGKey(1), (3, 5, hidden), dtype=jnp.float32)
    out2 = jax.block_until_ready(rmsnorm(x2, weight, eps=1e-8))
    ref2 = rmsnorm_ref(x2, weight, eps=1e-8)
    assert jnp.allclose(out2, ref2, atol=1e-5, rtol=1e-5)

    # bf16 input: f32 math inside, f32 output (matches PyTorch type promotion).
    xb = jax.random.normal(jax.random.PRNGKey(2), (batch, seq, hidden),
                           dtype=jnp.bfloat16)
    outb = jax.block_until_ready(rmsnorm(xb, weight, eps=1e-8))
    refb = rmsnorm_ref(xb, weight, eps=1e-8)
    assert outb.dtype == jnp.float32
    assert jnp.allclose(outb, refb, atol=2e-2, rtol=2e-2)

    # bf16-out fast path (explicit opt-in; changes only the store dtype).
    outb16 = jax.block_until_ready(rmsnorm(xb, weight, eps=1e-8,
                                           out_dtype=jnp.bfloat16))
    assert outb16.dtype == jnp.bfloat16
    assert jnp.allclose(outb16.astype(jnp.float32), refb, atol=3e-2, rtol=3e-2)

    # Larger row count: exercises byte-capped auto-tiling and the >=4-step clamp.
    x3 = jax.random.normal(jax.random.PRNGKey(3), (64, 33, hidden),
                           dtype=jnp.float32)
    out3 = jax.block_until_ready(rmsnorm(x3, weight, eps=1e-8))
    ref3 = rmsnorm_ref(x3, weight, eps=1e-8)
    assert jnp.allclose(out3, ref3, atol=1e-5, rtol=1e-5)

    print("KERNEL_OK")
</pallas_src>

<mosaic_0001>
module attributes {stable_mosaic.version = 11 : i64} {
  func.func @_rmsnorm_kernel(%arg0: i32, %arg1: memref<8x256xf32, #tpu.memory_space<vmem>>, %arg2: memref<1x256xf32, #tpu.memory_space<vmem>>, %arg3: memref<8x256xf32, #tpu.memory_space<vmem>>) attributes {dimension_semantics = [#tpu.dimension_semantics<parallel>], iteration_bounds = array<i64: 2>, scalar_prefetch = 0 : i64, scratch_operands = 0 : i64, tpu.core_type = #tpu.core_type<tc>, window_params = [{transform_indices = @transform_0, window_bounds = array<i64: 8, 256>}, {pipeline_mode = #tpu.pipeline_mode<synchronous>, transform_indices = @transform_1, window_bounds = array<i64: 1, 256>}, {transform_indices = @transform_2, window_bounds = array<i64: 8, 256>}]} {
    %c0 = arith.constant 0 : index
    %c0_0 = arith.constant 0 : index
    %0 = vector.load %arg1[%c0, %c0_0] : memref<8x256xf32, #tpu.memory_space<vmem>>, vector<8x256xf32>
    %1 = arith.mulf %0, %0 : vector<8x256xf32>
    %cst = arith.constant dense<0.000000e+00> : vector<8xf32>
    %2 = vector.multi_reduction <add>, %1, %cst [1] : vector<8x256xf32> to vector<8xf32>
    %3 = vector.shape_cast %2 : vector<8xf32> to vector<8x1xf32>
    %cst_1 = arith.constant 2.560000e+02 : f32
    %4 = vector.broadcast %cst_1 : f32 to vector<8x1xf32>
    %5 = arith.divf %3, %4 : vector<8x1xf32>
    %cst_2 = arith.constant 9.99999993E-9 : f32
    %6 = vector.broadcast %cst_2 : f32 to vector<8x1xf32>
    %7 = arith.addf %5, %6 : vector<8x1xf32>
    %8 = math.rsqrt %7 : vector<8x1xf32>
    %9 = vector.broadcast %8 : vector<8x1xf32> to vector<8x256xf32>
    %10 = arith.mulf %0, %9 : vector<8x256xf32>
    %c0_3 = arith.constant 0 : index
    %c0_4 = arith.constant 0 : index
    %11 = vector.load %arg2[%c0_3, %c0_4] : memref<1x256xf32, #tpu.memory_space<vmem>>, vector<1x256xf32>
    %12 = vector.broadcast %11 : vector<1x256xf32> to vector<8x256xf32>
    %13 = arith.mulf %12, %10 : vector<8x256xf32>
    %c0_5 = arith.constant 0 : index
    %c0_6 = arith.constant 0 : index
    %14 = vector.load %arg3[%c0_5, %c0_6] : memref<8x256xf32, #tpu.memory_space<vmem>>, vector<8x256xf32>
    tpu.vector_store %arg3[%c0_5, %c0_6], %13 {strides = array<i32>} : memref<8x256xf32, #tpu.memory_space<vmem>>, vector<8x256xf32>,
    return
  }
  func.func @transform_0(%arg0: i32) -> (i32, i32) {
    %c0_i32 = arith.constant 0 : i32
    %c0_i32_0 = arith.constant 0 : i32
    return %arg0, %c0_i32 : i32, i32
  }
  func.func @transform_1(%arg0: i32) -> (i32, i32) {
    %c0_i32 = arith.constant 0 : i32
    %c0_i32_0 = arith.constant 0 : i32
    %c0_i32_1 = arith.constant 0 : i32
    return %c0_i32, %c0_i32_0 : i32, i32
  }
  func.func @transform_2(%arg0: i32) -> (i32, i32) {
    %c0_i32 = arith.constant 0 : i32
    %c0_i32_0 = arith.constant 0 : i32
    return %arg0, %c0_i32 : i32, i32
  }
}

</mosaic_0001>

<bundles_post_ra>
// kernel: tpu_custom_call.1
= control target key start
LH: loop header
LB: loop body
LE: loop exit
PB: predicated region body
PF: predicated region fallthrough
CT: control target
= control target key end

     0   :  { %7 = vsyncpa [#allocation3], 0  ;;  %s688_s0 = inlined_call_operand.hbm [shape: f32[16,256], index: 0, kind: input, shape index: {}]   ;;  %s689_s1 = inlined_call_operand.hbm [shape: f32[1,256], index: 1, kind: input, shape index: {}]   ;;  %s690_s2 = inlined_call_operand.hbm [shape: f32[16,256], index: 2, kind: output, shape index: {}]  }
   0x1   :  { %9 = vsyncpa [#allocation3 + $0x1], 0 }
   0x2   :  { %10 = vsyncpa [#allocation6], 0 }
   0x3   :  { %11 = vsyncpa [#allocation4], 0 }
   0x4   :  { %13 = vsyncpa [#allocation4 + $0x1], 0  ;;  %s516_s9 = smov 0   ;;  %s518_s10 = smov 0  }
   0x5   :  { %s520_s11 = smov 0   ;;  %s522_s12 = smov 0  }
   0x6 LB: > { %s537_s13 = sadd.s32 4294967295, %s496_s12   ;;  %s297_s14 = sadd.s32 4294967294, %s496_s12   ;;  %s496_s12 = sphi %s522_s12, %s713_s12   ;;  %s492_s11 = sphi %s520_s11, %s712_s11   ;;  %s488_s10 = sphi %s518_s10, %s711_s10   ;;  %s484_s9 = sphi %s516_s9, %s710_s9  }
   0x7   : > { %p39_p0 = scmp.ne.s32.totalorder %s488_s10, %s484_s9  ;;  %p691_p1 = scmp.eq.s32.totalorder %s537_s13, 0 }
   0x8   : > { %p90_p3 = scmp.eq.s32.totalorder %s297_s14, 1  ;;  %p298_p5 = scmp.ge.s32.totalorder %s496_s12, 1 }
   0x9   : > { %p546_p4 = por %p691_p1, %p39_p0  ;;  %p97_p7 = scmp.lt.s32.totalorder %s496_s12, 3 }
   0xa   : > { %p551_p6 = por %p90_p3, %p39_p0  ;;  %s498_s18 = smov [#allocation5]  }
   0xb   : > { %s695_s15 = scalar_select %p546_p4, 1, 0 }
   0xc   : > { %s696_s16 = scalar_select %p551_p6, 1, 0 }
   0xd   : > { %p556_p8 = pnand %p298_p5, %p97_p7  ;;  %s110_s19 = sshll.u32 %s498_s18, 4  ;;  %s111_s19 = int_to_ptr.vmem [resolvable:$true] %s110_s19 }
   0xe   : > { %s564_s20 = sadd.s32 1, %s496_s12   ;;  %s26_s24 = sadd.s32 1, %s492_s11 }
   0xf   : > { %s697_s17 = scalar_select %p556_p8, 1, 0 }
  0x10   : > { %p323_p10 = pneg %p556_p8  ;;  %s23_s22 = ssub.s32 %s496_s12, %s564_s20 }
  0x11   : > { %p574_p12 = scmp.eq.s32.totalorder %s23_s22, 0  ;;  %p33_p13 = scmp.ne.s32.totalorder %s492_s11, %s488_s10 }
  0x12   : > { %p568_p11 = pnand %p323_p10, %p691_p1  ;;  %s385_s25 = scalar_lea.vmem %s111_s19, 32 }
  0x13   : > { %p386_p3 = scmp.ne.s32.totalorder %s111_s19, %s385_s25  ;;  %p393_p9 = scmp.lt.s32.totalorder %s111_s19, %s111_s19 }
  0x14   : > { %p376_p0 = pneg %p568_p11  ;;  %p394_p2 = scmp.lt.s32.totalorder %s385_s25, %s385_s25 }
  0x16   : > { %p388_p5 = pnand %p386_p3, %p376_p0  ;;  %p395_p10 = por %p394_p2, %p393_p9 }
  0x18   : > { %p389_p7 = pneg %p388_p5 }
  0x1a   : > { %p396_p1 = pnand %p395_p10, %p389_p7 }
  0x1c   : > { %399 = shalt.err (!%p396_p1)
}
  0x1d   : > { %326 = dma.hbm_to_vmem [thread:$0]  (!%p568_p11), %s689_s1, 32, %s111_s19, [#allocation6]  }
  0x1e   : > { %s591_s28 = scalar_select %p574_p12, %s492_s11, %s26_s24  }
  0x1f   : > { %p34_p1 = scmp.eq.s32.totalorder %s496_s12, 0  ;;  %p700_p2 = scmp.eq.s32.totalorder %s537_s13, 1 }
  0x20   : > { %p336_p0 = scmp.lt.s32.totalorder %s496_s12, 2  ;;  %s121_s30 = sand.u32 1, %s492_s11  }
  0x21   : > { %p599_p9 = por %p700_p2, %p33_p13  ;;  %p35_p3 = por %p34_p1, %p33_p13 }
  0x22   : > { %s301_s3 = sshll.u32 %s121_s30, 4  ;;  %s313_s4 = sshll.u32 %s496_s12, 8 }
  0x23   : > { %s701_s29 = scalar_select %p599_p9, 1, 0 }
  0x24   : > { %s612_s7 = scalar_lea.hbm %s688_s0, %s313_s4  ;;  %s125_s8 = scalar_lea.vmem [#allocation2], %s301_s3 }
  0x25   : > { %s133_s14 = sshll.u32 %s125_s8, 4  ;;  %p614_p11 = pnand %p336_p0, %p35_p3  ;;  %s134_s14 = int_to_ptr.vmem [resolvable:$true] %s133_s14 }
  0x26   : > { %s122_s19 = scalar_lea.sflag [#allocation3], %s121_s30  ;;  %s400_s21 = scalar_lea.hbm %s612_s7, 256 }
  0x27   : > { %p401_p12 = scmp.ne.s32.totalorder %s612_s7, %s400_s21  ;;  %p402_p13 = pneg %p614_p11 }
  0x28   : > { %s405_s24 = scalar_lea.hbm %s688_s0, 512  ;;  %p406_p10 = scmp.lt.s32.totalorder %s612_s7, %s688_s0 }
  0x29   : > { %p403_p5 = pnand %p402_p13, %p401_p12  ;;  %p407_p1 = scmp.lt.s32.totalorder %s405_s24, %s400_s21 }
  0x2b   : > { %p404_p7 = pneg %p403_p5  ;;  %p408_p2 = por %p407_p1, %p406_p10 }
  0x2d   : > { %p409_p0 = pnand %p408_p2, %p404_p7 }
  0x2f   : > { %412 = shalt.err (!%p409_p0)
}
  0x30   : > { %s413_s27 = scalar_lea.vmem %s134_s14, 256  ;;  %s499_s30 = smov [#allocation2]  }
  0x31   : > { %p414_p3 = scmp.ne.s32.totalorder %s134_s14, %s413_s27  ;;  %s418_s3 = sshll.u32 %s499_s30, 4  ;;  %s419_s3 = int_to_ptr.vmem [resolvable:$false] %s418_s3 }
  0x32   : > { %s420_s4 = scalar_lea.vmem %s419_s3, 512  ;;  %p421_p12 = scmp.lt.s32.totalorder %s134_s14, %s419_s3 }
  0x33   : > { %p416_p6 = pnand %p414_p3, %p402_p13  ;;  %p422_p5 = scmp.lt.s32.totalorder %s420_s4, %s413_s27 }
  0x35   : > { %p417_p9 = pneg %p416_p6  ;;  %p423_p4 = por %p422_p5, %p421_p12 }
  0x37   : > { %p424_p8 = pnand %p423_p4, %p417_p9 }
  0x39   : > { %427 = shalt.err (!%p424_p8)
}
  0x3a   : > { %330 = dma.hbm_to_vmem [thread:$0]  (!%p614_p11), %s612_s7, 256, %s134_s14, %s122_s19  }
  0x3b   : > { %p703_p7 = scmp.ne.s32.totalorder %s697_s17, 0 }
  0x3c   : > { %s635_s5 = sand.u32 (!%p703_p7), 1, %s488_s10   ;;  %p704_p6 = scmp.ne.s32.totalorder (!%p703_p7), %s695_s15, 0 }
  0x3d   : > { %142 = sbr.rel (%p703_p7) target bundleno = 248 (0xf8), region = 28  ;;  %s305_s6 = sshll.u32 (!%p703_p7), %s635_s5, 4 }
  0x3e   : > { %s145_s8 = scalar_lea.sflag (!%p703_p7), [#allocation3], %s635_s5  ;;  %s148_s21 = scalar_lea.vmem (!%p703_p7), [#allocation2], %s305_s6 }
  0x42   : > { %471 = dma.done.wait (%p704_p6), %s145_s8, 256  }
  0x43   : > { %473 = vsyncadd (%p704_p6), %s145_s8, 4294967040  ;;  %p705_p4 = scmp.eq.s32.totalorder %s537_s13, 0 }
  0x45   : > { %475 = dma.done.wait (%p705_p4), [#allocation6], 32   ;;  %p706_p8 = pmov %p705_p4 }
  0x46   : > { %v173_v0 = vld [vmem:[%s148_s21] sm:$0xff]  ;;  %v174_v1 = vld [vmem:[%s148_s21 + $0x8] sm:$0xff]  ;;  %v188_v8 = vlaneseq  ;;  %s314_s15 = sshll.u32 %s537_s13, 8  ;;  %s172_s17 = scalar_lea.vmem [#allocation7], %s305_s6 }
  0x47   : > { %477 = vsyncadd (%p706_p8), [#allocation6], 4294967264  ;;  %v175_v2 = vmul.f32 %v173_v0, %v173_v0  ;;  %v176_v3 = vmul.f32 %v174_v1, %v174_v1  ;;  %v186_v12 = vld [vmem:[#allocation5] sm:$0x3]  ;;  %s217_s7 = sshll.u32 %s172_s17, 4  ;;  %s651_s19 = scalar_lea.hbm %s690_s2, %s314_s15  ;;  %s218_s7 = int_to_ptr.vmem [resolvable:$true] %s217_s7 }
  0x48   : > { %v189_v9 = vshrl.u32 %v188_v8, 7  ;;  %s203_s22 = scalar_lea.sflag [#allocation4], %s635_s5  ;;  %s428_s23 = scalar_lea.vmem %s218_s7, 256 }
  0x49   : > { %v177_v4 = vadd.f32 %v176_v3, %v175_v2  ;;  %p429_p9 = scmp.ne.s32.totalorder %s218_s7, %s428_s23  ;;  %p707_p11 = scmp.ne.s32.totalorder %s701_s29, 0 }
  0x4a   : > { %v190_v10 = vsub.s32 0, %v189_v9  ;;  %v194_v11 = vsub.s32 1, %v189_v9  ;;  %s500_s13 = smov [#allocation7]  }
  0x4b   : > { %178 = vadd.xlane.f32.xlu0 %v177_v4  ;;  %p430_p13 = pnand %p429_p9, %p707_p11  ;;  %s432_s24 = sshll.u32 %s500_s13, 4  ;;  %s433_s24 = int_to_ptr.vmem [resolvable:$false] %s432_s24 }
  0x4c   : > { %v191_v13 = vrot.slane %v186_v12, %v190_v10  ;;  %v195_v14 = vrot.slane %v186_v12, %v194_v11  ;;  %s434_s25 = scalar_lea.vmem %s433_s24, 512  ;;  %p435_p1 = scmp.lt.s32.totalorder %s218_s7, %s433_s24 }
  0x4d   : > { %p431_p10 = pneg %p430_p13  ;;  %p436_p2 = scmp.lt.s32.totalorder %s434_s25, %s428_s23 }
  0x4f   : > { %p437_p0 = por %p436_p2, %p435_p1 }
  0x51   : > { %p438_p3 = pnand %p437_p0, %p431_p10 }
  0xd4   : > { %v179_v5 = vpop.xlane.xlu0 %178 }
  0xd5   : > { %v181_v6 = vmul.f32 0.00390625, %v179_v5 }
  0xd7   : > { %v182_v7 = vadd.f32 1e-08, %v181_v6 }
  0xd9   : > { %372 = vrsqrt.f32 %v182_v7 }
  0xe6   : > { %v373_v15 = vpop.eup %372 }
  0xe7   : > { %v184_v16 = vmul.f32 %v373_v15, %v173_v0  ;;  %v185_v17 = vmul.f32 %v373_v15, %v174_v1 }
  0xe9   : > { %v198_v18 = vmul.f32 %v191_v13, %v184_v16  ;;  %v199_v19 = vmul.f32 %v195_v14, %v185_v17 }
  0xeb   : > { %200 = vst [vmem:[%s172_s17] sm:$0xff] %v198_v18  ;;  %201 = vst [vmem:[%s172_s17 + $0x8] sm:$0xff] %v199_v19 }
  0xec   : > { %441 = shalt.err (!%p438_p3)
}
  0xed   : > { %s442_s26 = scalar_lea.hbm %s651_s19, 256  ;;  %s446_s3 = scalar_lea.hbm %s690_s2, 512 }
  0xee   : > { %p443_p12 = scmp.ne.s32.totalorder %s651_s19, %s442_s26  ;;  %p447_p6 = scmp.lt.s32.totalorder %s651_s19, %s690_s2 }
  0xef   : > { %p448_p4 = scmp.lt.s32.totalorder %s446_s3, %s442_s26 }
  0xf0   : > { %p444_p5 = pnand %p443_p12, %p707_p11 }
  0xf1   : > { %p449_p8 = por %p448_p4, %p447_p6 }
  0xf2   : > { %p445_p7 = pneg %p444_p5 }
  0xf4   : > { %p450_p9 = pnand %p449_p8, %p445_p7 }
  0xf6   : > { %453 = shalt.err (!%p450_p9)
}
  0xf7   : > { %321 = dma.vmem_to_hbm [thread:$0]  (%p707_p11), %s218_s7, 256, %s651_s19, %s203_s22  }
  0xf8 PF: > { %s229_s6 = sand.u32 1, %s484_s9   ;;  %p708_p13 = scmp.ne.s32.totalorder %s696_s16, 0 }
  0xf9   : > { %p709_p10 = scmp.ge.s32.totalorder %s496_s12, 2  ;;  %s230_s8 = scalar_lea.sflag [#allocation4], %s229_s6 }
  0xfb   : > { %p332_p1 = pnand %p709_p10, %p708_p13 }
  0xfd   : > { %p333_p2 = pneg %p332_p1 }
  0xff   : > { %479 = dma.done.wait (%p333_p2), %s230_s8, 256  }
 0x100   : > { %481 = vsyncadd (%p333_p2), %s230_s8, 4294967040  ;;  %p16_p0 = scmp.ge.s32.totalorder %s564_s20, 4   ;;  %s710_s9 = smov %s488_s10 }
 0x101   : > { %s711_s10 = smov %s492_s11  ;;  %s712_s11 = smov %s591_s28 }
 0x102   : > { %s713_s12 = smov %s564_s20  ;;  %18 = sbr.rel (!%p16_p0) target bundleno = 6 (0x6), region = 77 }
 0x107   :  { %235 = vsyncpa [#allocation3], 1 }
 0x108   :  { %237 = vsyncpa [#allocation3 + $0x1], 1 }
 0x109   :  { %238 = vsyncpa [#allocation6], 1 }
 0x10a   :  { %239 = vsyncpa [#allocation4], 1 }
 0x10b   :  { %241 = vsyncpa [#allocation4 + $0x1], 1 }

</bundles_post_ra>
